<compile_context>
chip_gen: v6e
topology: v6e:2x2x1
jax: 0.10.0
libtpu: 0.0.40
codegen_flags: <defaults>
</compile_context>

<pallas_src>
import functools

import jax
import jax.numpy as jnp
from jax.experimental import pallas as pl
from jax.experimental.pallas import tpu as pltpu


def _upsample3d_kernel(x_ref, w_ref, b_ref, o_ref, *, Rt, H, WCin, L):
    # x_ref: (Rt, H, W*Cin)      lane-dense input tile (rows index (n, d) pairs)
    # w_ref: (W*Cin, 2*L)        block-diag BN-folded weight, both kd slabs (resident)
    # b_ref: (1, 2*L)            BN shift broadcast over (kd, kh, w, kw) lanes
    # o_ref: (Rt, 2, H, L)       output slab: (row, kd, h, (kh, w, kw, co))
    xb = x_ref[...].reshape(Rt * H, WCin)                           # (Rt*H, 128)
    y = jnp.dot(xb, w_ref[...], preferred_element_type=jnp.float32)  # (Rt*H, 2L)
    y = (y + b_ref[...]).astype(o_ref.dtype)                        # BN shift
    # Both lane slices are 128-aligned: plain unmasked stores, no relayout.
    o_ref[:, 0:1, :, :] = y[:, :L].reshape(Rt, 1, H, L)
    o_ref[:, 1:2, :, :] = y[:, L:].reshape(Rt, 1, H, L)


def _pick_row_tile(R, H, WCin, L2, itemsize,
                   vmem_block_budget=16 * 2**20, max_m=4096):
    """Largest divisor of R whose double-buffered in+out blocks fit the budget.
    Keeps >= 2 grid steps whenever possible so v7x can shard across both TCs."""
    best = 1
    for rt in range(1, R + 1):
        if R % rt:
            continue
        if rt * H > max_m:                       # matmul M-dim target <= ~4K rows
            continue
        if R >= 2 and R // rt < 2:               # leave >= 2 parallel steps (v7x)
            continue
        step_bytes = 2 * rt * H * (WCin + L2) * itemsize   # 2x: double-buffered
        if step_bytes > vmem_block_budget:
            continue
        best = rt
    return best


def upsample3d_block(x, w, gamma, beta, running_mean, running_var,
                     eps=1e-5, row_tile=None):
    """Dense ConvTranspose3d(k=2, s=2) + eval-mode BatchNorm.
    x: [N, D, H, W, Cin] f32 -> [N, 2D, 2H, 2W, Cout] f32."""
    N, D, H, W, Cin = x.shape
    K = w.shape[0]
    Cout = w.shape[-1]
    assert K == 2, "Upsample3DBlock requires kernel_size == 2 (stride == 2)"

    WCin = W * Cin                  # 128 for the demo shapes -> full MXU depth
    L = K * W * K * Cout            # one kd slab of output lanes: (kh, w, kw, co)
    L2 = K * L                      # both kd slabs concatenated: (kd, kh, w, kw, co)

    # ---- Glue in plain JAX (weight-sized, cheap): fold BN, build block-diag W.
    scale = gamma / jnp.sqrt(running_var + eps)                    # (Cout,)
    shift = beta - running_mean * scale                            # (Cout,)
    wf = (w * scale).astype(jnp.float32)                           # (K,K,K,Cin,Cout)
    eye = jnp.eye(W, dtype=jnp.float32)
    # big2[(w,ci), (kd, kh, w', kw, co)] = delta(w, w') * wf[kd, kh, kw, ci, co]
    big2 = jnp.einsum('wv,dhkio->widhvko', eye, wf).reshape(WCin, L2)
    big2 = big2.astype(x.dtype)                                    # (128, 2L)
    bias_lane = jnp.broadcast_to(shift, (L2 // Cout, Cout)).reshape(1, L2)
    bias_lane = bias_lane.astype(jnp.float32)

    # ---- Lane-dense views (free contiguous reshapes): fold N into the row dim.
    R = N * D
    xr = x.reshape(R, H, WCin)

    itemsize = jnp.dtype(x.dtype).itemsize
    if row_tile is None:
        row_tile = _pick_row_tile(R, H, WCin, L2, itemsize)
    assert R % row_tile == 0

    kernel = functools.partial(_upsample3d_kernel, Rt=row_tile, H=H,
                               WCin=WCin, L=L)

    out4 = pl.pallas_call(
        kernel,
        out_shape=jax.ShapeDtypeStruct((R, K, H, L), x.dtype),
        grid=(R // row_tile,),
        in_specs=[
            pl.BlockSpec((row_tile, H, WCin), lambda i: (i, 0, 0)),
            pl.BlockSpec((WCin, L2), lambda i: (0, 0)),   # constant idx: DMA'd once
            pl.BlockSpec((1, L2), lambda i: (0, 0)),      # constant idx: DMA'd once
        ],
        out_specs=pl.BlockSpec((row_tile, K, H, L), lambda i: (i, 0, 0, 0)),
        compiler_params=pltpu.CompilerParams(
            dimension_semantics=("parallel",),
            # Explicit scoped-VMEM cap: > v5e's 16 MiB default, < v7x's 64 MiB
            # physical; the 16 MiB double-buffered block budget leaves headroom.
            vmem_limit_bytes=32 * 2**20),
    )(xr, big2, bias_lane)

    # (N*D, 2, H, 2*W*2*Cout) -> (N, 2D, 2H, 2W, Cout): contiguous, free.
    return out4.reshape(N, K * D, K * H, K * W, Cout)


def _reference(x, w, gamma, beta, mean, var, eps=1e-5):
    # Pure-JAX dense reference: ConvTranspose3d(k=2, s=2) + eval BN (no ReLU).
    N, D, H, W, Cin = x.shape
    K = w.shape[0]
    Cout = w.shape[-1]
    y = jnp.einsum('ndhwi,pqrio->ndphqwro', x, w)       # (N,D,2,H,2,W,2,Cout)
    y = y.reshape(N, K * D, K * H, K * W, Cout)
    scale = gamma / jnp.sqrt(var + eps)
    bias = beta - mean * scale
    return y * scale + bias


if __name__ == "__main__":
    # Small shapes consistent with the module: in_planes=8, out_planes=4, k=2, s=2.
    N, D, H, W = 2, 16, 16, 16
    Cin, Cout, K = 8, 4, 2

    key = jax.random.PRNGKey(0)
    kx, kw, kg, kb, km, kv = jax.random.split(key, 6)
    x = jax.random.normal(kx, (N, D, H, W, Cin), jnp.float32)
    w = jax.random.normal(kw, (K, K, K, Cin, Cout), jnp.float32) * 0.1
    gamma = 1.0 + 0.1 * jax.random.normal(kg, (Cout,), jnp.float32)
    beta = 0.1 * jax.random.normal(kb, (Cout,), jnp.float32)
    running_mean = 0.1 * jax.random.normal(km, (Cout,), jnp.float32)
    running_var = jnp.abs(1.0 + 0.1 * jax.random.normal(kv, (Cout,), jnp.float32))

    out = upsample3d_block(x, w, gamma, beta, running_mean, running_var)
    out = jax.block_until_ready(out)

    ref = _reference(x, w, gamma, beta, running_mean, running_var)
    assert out.shape == (N, K * D, K * H, K * W, Cout)
    assert jnp.allclose(out, ref, rtol=1e-3, atol=1e-3), "mismatch vs reference"

    print("KERNEL_OK")
</pallas_src>

<mosaic_0001>
module attributes {stable_mosaic.version = 11 : i64} {
  func.func @_upsample3d_kernel(%arg0: i32, %arg1: memref<16x16x128xf32, #tpu.memory_space<vmem>>, %arg2: memref<128x512xf32, #tpu.memory_space<vmem>>, %arg3: memref<1x512xf32, #tpu.memory_space<vmem>>, %arg4: memref<16x2x16x256xf32, #tpu.memory_space<vmem>>) attributes {dimension_semantics = [#tpu.dimension_semantics<parallel>], iteration_bounds = array<i64: 2>, scalar_prefetch = 0 : i64, scratch_operands = 0 : i64, tpu.core_type = #tpu.core_type<tc>, window_params = [{transform_indices = @transform_0, window_bounds = array<i64: 16, 16, 128>}, {pipeline_mode = #tpu.pipeline_mode<synchronous>, transform_indices = @transform_1, window_bounds = array<i64: 128, 512>}, {pipeline_mode = #tpu.pipeline_mode<synchronous>, transform_indices = @transform_2, window_bounds = array<i64: 1, 512>}, {transform_indices = @transform_3, window_bounds = array<i64: 16, 2, 16, 256>}]} {
    %c0 = arith.constant 0 : index
    %c0_0 = arith.constant 0 : index
    %c0_1 = arith.constant 0 : index
    %0 = vector.load %arg1[%c0, %c0_0, %c0_1] : memref<16x16x128xf32, #tpu.memory_space<vmem>>, vector<16x16x128xf32>
    %1 = vector.shape_cast %0 : vector<16x16x128xf32> to vector<256x128xf32>
    %c0_2 = arith.constant 0 : index
    %c0_3 = arith.constant 0 : index
    %2 = vector.load %arg2[%c0_2, %c0_3] : memref<128x512xf32, #tpu.memory_space<vmem>>, vector<128x512xf32>
    %cst = arith.constant dense<0.000000e+00> : vector<256x512xf32>
    %3 = tpu.matmul %1, %2, %cst {dimension_numbers = #tpu.dot_dimension_numbers<[1], [0], [0], [1], [0, 0, 1, 1], [], []>} : vector<256x128xf32>, vector<128x512xf32>, vector<256x512xf32> -> vector<256x512xf32>
    %c0_4 = arith.constant 0 : index
    %c0_5 = arith.constant 0 : index
    %4 = vector.load %arg3[%c0_4, %c0_5] : memref<1x512xf32, #tpu.memory_space<vmem>>, vector<1x512xf32>
    %5 = vector.broadcast %4 : vector<1x512xf32> to vector<256x512xf32>
    %6 = arith.addf %3, %5 : vector<256x512xf32>
    %7 = vector.extract_strided_slice %6 {offsets = [0, 0], sizes = [256, 256], strides = [1, 1]} : vector<256x512xf32> to vector<256x256xf32>
    %8 = vector.shape_cast %7 : vector<256x256xf32> to vector<16x1x16x256xf32>
    %c0_6 = arith.constant 0 : index
    %c0_7 = arith.constant 0 : index
    %c0_8 = arith.constant 0 : index
    %c0_9 = arith.constant 0 : index
    %9 = vector.load %arg4[%c0_6, %c0_7, %c0_8, %c0_9] : memref<16x2x16x256xf32, #tpu.memory_space<vmem>>, vector<16x1x16x256xf32>
    tpu.vector_store %arg4[%c0_6, %c0_7, %c0_8, %c0_9], %8 {strides = array<i32>} : memref<16x2x16x256xf32, #tpu.memory_space<vmem>>, vector<16x1x16x256xf32>,
    %10 = vector.extract_strided_slice %6 {offsets = [0, 256], sizes = [256, 256], strides = [1, 1]} : vector<256x512xf32> to vector<256x256xf32>
    %11 = vector.shape_cast %10 : vector<256x256xf32> to vector<16x1x16x256xf32>
    %c0_10 = arith.constant 0 : index
    %c1 = arith.constant 1 : index
    %c0_11 = arith.constant 0 : index
    %c0_12 = arith.constant 0 : index
    %12 = vector.load %arg4[%c0_10, %c1, %c0_11, %c0_12] : memref<16x2x16x256xf32, #tpu.memory_space<vmem>>, vector<16x1x16x256xf32>
    tpu.vector_store %arg4[%c0_10, %c1, %c0_11, %c0_12], %11 {strides = array<i32>} : memref<16x2x16x256xf32, #tpu.memory_space<vmem>>, vector<16x1x16x256xf32>,
    return
  }
  func.func @transform_0(%arg0: i32) -> (i32, i32, i32) {
    %c0_i32 = arith.constant 0 : i32
    %c0_i32_0 = arith.constant 0 : i32
    %c0_i32_1 = arith.constant 0 : i32
    return %arg0, %c0_i32, %c0_i32_0 : i32, i32, i32
  }
  func.func @transform_1(%arg0: i32) -> (i32, i32) {
    %c0_i32 = arith.constant 0 : i32
    %c0_i32_0 = arith.constant 0 : i32
    %c0_i32_1 = arith.constant 0 : i32
    return %c0_i32, %c0_i32_0 : i32, i32
  }
  func.func @transform_2(%arg0: i32) -> (i32, i32) {
    %c0_i32 = arith.constant 0 : i32
    %c0_i32_0 = arith.constant 0 : i32
    %c0_i32_1 = arith.constant 0 : i32
    return %c0_i32, %c0_i32_0 : i32, i32
  }
  func.func @transform_3(%arg0: i32) -> (i32, i32, i32, i32) {
    %c0_i32 = arith.constant 0 : i32
    %c0_i32_0 = arith.constant 0 : i32
    %c0_i32_1 = arith.constant 0 : i32
    %c0_i32_2 = arith.constant 0 : i32
    return %arg0, %c0_i32, %c0_i32_0, %c0_i32_1 : i32, i32, i32, i32
  }
}

</mosaic_0001>

<bundles_post_ra>
// kernel: tpu_custom_call.1
= control target key start
LH: loop header
LB: loop body
LE: loop exit
PB: predicated region body
PF: predicated region fallthrough
CT: control target
= control target key end

     0   :  { %8 = vsyncpa [#allocation3], 0  ;;  %s1984_s0 = inlined_call_operand.hbm [shape: f32[32,16,128], index: 0, kind: input, shape index: {}]   ;;  %s1985_s1 = inlined_call_operand.hbm [shape: f32[128,512], index: 1, kind: input, shape index: {}]   ;;  %s1986_s2 = inlined_call_operand.hbm [shape: f32[1,512], index: 2, kind: input, shape index: {}]   ;;  %s1987_s3 = inlined_call_operand.hbm [shape: f32[32,2,16,256], index: 3, kind: output, shape index: {}]  }
   0x1   :  { %10 = vsyncpa [#allocation3 + $0x1], 0 }
   0x2   :  { %11 = vsyncpa [#allocation6], 0 }
   0x3   :  { %12 = vsyncpa [#allocation4], 0 }
   0x4   :  { %14 = vsyncpa [#allocation4 + $0x1], 0  ;;  %s1430_s12 = smov 0   ;;  %s1432_s13 = smov 0  }
   0x5   :  { %s1434_s14 = smov 0   ;;  %s1436_s15 = smov 0  }
   0x6 LB: > { %s1451_s16 = sadd.s32 4294967295, %s1397_s15   ;;  %s1087_s17 = sadd.s32 4294967294, %s1397_s15   ;;  %s1397_s15 = sphi %s1436_s15, %s2009_s15   ;;  %s1393_s14 = sphi %s1434_s14, %s2008_s14   ;;  %s1389_s13 = sphi %s1432_s13, %s2007_s13   ;;  %s1385_s12 = sphi %s1430_s12, %s2006_s12  }
   0x7   : > { %p40_p0 = scmp.ne.s32.totalorder %s1389_s13, %s1385_s12  ;;  %p1988_p1 = scmp.eq.s32.totalorder %s1451_s16, 0 }
   0x8   : > { %p112_p3 = scmp.eq.s32.totalorder %s1087_s17, 1  ;;  %p1088_p5 = scmp.ge.s32.totalorder %s1397_s15, 1 }
   0x9   : > { %p1460_p4 = por %p1988_p1, %p40_p0  ;;  %p119_p7 = scmp.lt.s32.totalorder %s1397_s15, 3 }
   0xa   : > { %p1465_p6 = por %p112_p3, %p40_p0  ;;  %s1399_s21 = smov [#allocation5]  }
   0xb   : > { %s1992_s18 = scalar_select %p1460_p4, 1, 0 }
   0xc   : > { %s1993_s19 = scalar_select %p1465_p6, 1, 0 }
   0xd   : > { %p1470_p8 = pnand %p1088_p5, %p119_p7  ;;  %s131_s22 = sshll.u32 %s1399_s21, 4  ;;  %s132_s22 = int_to_ptr.vmem [resolvable:$true] %s131_s22 }
   0xe   : > { %s1400_s24 = smov [#allocation7]   ;;  %s1260_s26 = scalar_lea.vmem %s132_s22, 8192 }
   0xf   : > { %s1994_s20 = scalar_select %p1470_p8, 1, 0 }
  0x10   : > { %p1187_p9 = pneg %p1470_p8  ;;  %s145_s25 = sshll.u32 %s1400_s24, 4  ;;  %s146_s25 = int_to_ptr.vmem [resolvable:$true] %s145_s25 }
  0x11   : > { %p1261_p13 = scmp.ne.s32.totalorder %s132_s22, %s1260_s26  ;;  %p1268_p5 = scmp.lt.s32.totalorder %s132_s22, %s132_s22 }
  0x12   : > { %p1479_p11 = pnand %p1187_p9, %p1988_p1  ;;  %p1269_p7 = scmp.lt.s32.totalorder %s1260_s26, %s1260_s26 }
  0x14   : > { %p1251_p12 = pneg %p1479_p11  ;;  %p1270_p10 = por %p1269_p7, %p1268_p5 }
  0x16   : > { %p1263_p0 = pnand %p1261_p13, %p1251_p12 }
  0x18   : > { %p1264_p3 = pneg %p1263_p0 }
  0x1a   : > { %p1271_p9 = pnand %p1270_p10, %p1264_p3 }
  0x1c   : > { %1274 = shalt.err (!%p1271_p9)
}
  0x1d   : > { %s1401_s27 = smov 512   ;;  %s1402_s28 = smov 32  }
  0x1e   : > { %1190 = dma.hbm_to_vmem [thread:$0]  (!%p1479_p11), %s1985_s1, 8192, %s132_s22, [#allocation6], %s1401_s27, %s1401_s27, %s1402_s28  }
  0x1f   : > { %s1286_s4 = scalar_lea.vmem %s146_s25, 64  ;;  %p1294_p2 = scmp.lt.s32.totalorder %s146_s25, %s146_s25 }
  0x20   : > { %p1287_p1 = scmp.ne.s32.totalorder %s146_s25, %s1286_s4  ;;  %p1295_p6 = scmp.lt.s32.totalorder %s1286_s4, %s1286_s4 }
  0x22   : > { %p1289_p13 = pnand %p1287_p1, %p1251_p12  ;;  %p1296_p5 = por %p1295_p6, %p1294_p2 }
  0x24   : > { %p1290_p0 = pneg %p1289_p13 }
  0x26   : > { %p1297_p10 = pnand %p1296_p5, %p1290_p0 }
  0x28   : > { %1300 = shalt.err (!%p1297_p10)
}
  0x29   : > { %1193 = dma.hbm_to_vmem [thread:$0]  (!%p1479_p11), %s1986_s2, 64, %s146_s25, [#allocation6]  }
  0x2a   : > { %s1502_s7 = sadd.s32 1, %s1397_s15   ;;  %s27_s8 = sadd.s32 1, %s1393_s14 }
  0x2b   : > { %s24_s9 = ssub.s32 %s1397_s15, %s1502_s7  ;;  %p34_p1 = scmp.ne.s32.totalorder %s1393_s14, %s1389_s13 }
  0x2c   : > { %p25_p2 = scmp.eq.s32.totalorder %s24_s9, 0  ;;  %p35_p6 = scmp.eq.s32.totalorder %s1397_s15, 0 }
  0x2d   : > { %p1996_p12 = scmp.eq.s32.totalorder %s1451_s16, 1  ;;  %p1204_p7 = scmp.lt.s32.totalorder %s1397_s15, 2 }
  0x2e   : > { %s1518_s11 = scalar_select %p25_p2, %s1393_s14, %s27_s8  }
  0x2f   : > { %p1512_p3 = por %p1996_p12, %p34_p1  ;;  %p36_p9 = por %p35_p6, %p34_p1 }
  0x30   : > { %s156_s17 = sand.u32 1, %s1393_s14   ;;  %s1172_s22 = sshll.u32 %s1397_s15, 12 }
  0x31   : > { %s1997_s10 = scalar_select %p1512_p3, 1, 0 }
  0x32   : > { %s1092_s21 = sshll.u32 %s156_s17, 8  ;;  %s1525_s25 = scalar_lea.hbm %s1984_s0, %s1172_s22 }
  0x33   : > { %s160_s26 = scalar_lea.vmem [#allocation2], %s1092_s21  ;;  %p1529_p11 = pnand %p1204_p7, %p36_p9 }
  0x34   : > { %s168_s27 = sshll.u32 %s160_s26, 4  ;;  %s1533_s29 = scalar_lea.sflag [#allocation3], %s156_s17  ;;  %s1527_s27 = int_to_ptr.vmem [resolvable:$true] %s168_s27 }
  0x35   : > { %s1301_s30 = scalar_lea.hbm %s1525_s25, 4096  ;;  %p1303_p0 = pneg %p1529_p11 }
  0x36   : > { %p1302_p13 = scmp.ne.s32.totalorder %s1525_s25, %s1301_s30  ;;  %s1306_s6 = scalar_lea.hbm %s1984_s0, 8192 }
  0x37   : > { %p1307_p1 = scmp.lt.s32.totalorder %s1525_s25, %s1984_s0  ;;  %p1308_p2 = scmp.lt.s32.totalorder %s1306_s6, %s1301_s30 }
  0x38   : > { %p1304_p5 = pnand %p1303_p0, %p1302_p13 }
  0x39   : > { %p1309_p6 = por %p1308_p2, %p1307_p1 }
  0x3a   : > { %p1305_p10 = pneg %p1304_p5 }
  0x3c   : > { %p1310_p12 = pnand %p1309_p6, %p1305_p10 }
  0x3e   : > { %1313 = shalt.err (!%p1310_p12)
}
  0x3f   : > { %s1314_s17 = scalar_lea.vmem %s1527_s27, 4096  ;;  %s1403_s21 = smov [#allocation2]  }
  0x40   : > { %p1315_p7 = scmp.ne.s32.totalorder %s1527_s27, %s1314_s17  ;;  %s1319_s22 = sshll.u32 %s1403_s21, 4  ;;  %s1320_s22 = int_to_ptr.vmem [resolvable:$false] %s1319_s22 }
  0x41   : > { %s1321_s23 = scalar_lea.vmem %s1320_s22, 8192  ;;  %p1322_p5 = scmp.lt.s32.totalorder %s1527_s27, %s1320_s22 }
  0x42   : > { %p1317_p9 = pnand %p1315_p7, %p1303_p0  ;;  %p1323_p3 = scmp.lt.s32.totalorder %s1321_s23, %s1314_s17 }
  0x44   : > { %p1318_p13 = pneg %p1317_p9  ;;  %p1324_p4 = por %p1323_p3, %p1322_p5 }
  0x46   : > { %p1325_p8 = pnand %p1324_p4, %p1318_p13 }
  0x48   : > { %1328 = shalt.err (!%p1325_p8)
}
  0x49   : > { %s1404_s24 = smov 128   ;;  %s1405_s26 = smov 8  }
  0x4a   : > { %1197 = dma.hbm_to_vmem [thread:$0]  (!%p1529_p11), %s1525_s25, 4096, %s1527_s27, %s1533_s29, %s1404_s24, %s1404_s24, %s1405_s26  }
  0x4b   : > { %p1999_p0 = scmp.ne.s32.totalorder %s1994_s20, 0 }
  0x4c   : > { %s1557_s30 = sand.u32 (!%p1999_p0), 1, %s1389_s13   ;;  %p2000_p4 = scmp.ne.s32.totalorder (!%p1999_p0), %s1992_s18, 0 }
  0x4d   : > { %180 = sbr.rel (%p1999_p0) target bundleno = 455 (0x1c7), region = 32  ;;  %s1097_s4 = sshll.u32 (!%p1999_p0), %s1557_s30, 8 }
  0x4e   : > { %s183_s5 = scalar_lea.sflag (!%p1999_p0), [#allocation3], %s1557_s30  ;;  %s1561_s6 = scalar_lea.vmem (!%p1999_p0), [#allocation2], %s1097_s4 }
  0x52   : > { %1372 = dma.done.wait (%p2000_p4), %s183_s5, 4096  }
  0x53   : > { %1374 = vsyncadd (%p2000_p4), %s183_s5, 4294963200  ;;  %p2001_p8 = scmp.eq.s32.totalorder %s1451_s16, 0 }
  0x55   : > { %1376 = dma.done.wait (%p2001_p8), [#allocation6], 8256   ;;  %p2002_p3 = pmov %p2001_p8 }
  0x56   : > { %v1406_v0 = vmov 0.0   ;;  %v312_v1 = vld [vmem:[#allocation5 + $0x1e8] sm:$0xff]  ;;  %v314_v2 = vld [vmem:[#allocation5 + $0x1f8] sm:$0xff]  ;;  %v311_v3 = vld [vmem:[#allocation5 + $0x1e0] sm:$0xff]  ;;  %s1100_s18 = sshll.u32 %s1557_s30, 10  ;;  %s1174_s25 = sshll.u32 %s1451_s16, 14 }
  0x57   : > { %1378 = vsyncadd (%p2002_p3), [#allocation6], 4294959040  ;;  %401 = vmatprep.mubr.f32.mxu0 %v1406_v0  ;;  %658 = vmatprep.mubr.f32.mxu1 %v1406_v0  ;;  %v313_v4 = vld [vmem:[#allocation5 + $0x1f0] sm:$0xff]  ;;  %v308_v5 = vld [vmem:[#allocation5 + $0x1c8] sm:$0xff]  ;;  %s1678_s20 = scalar_lea.vmem [#allocation8], %s1100_s18  ;;  %s1933_s8 = scalar_lea.hbm %s1987_s3, %s1174_s25 }
  0x58   : > { %337 = vmatprep.subr.mxu0 %v312_v1  ;;  %594 = vmatprep.subr.mxu1 %v314_v2  ;;  %v310_v6 = vld [vmem:[#allocation5 + $0x1d8] sm:$0xff]  ;;  %v307_v7 = vld [vmem:[#allocation5 + $0x1c0] sm:$0xff]  ;;  %v309_v8 = vld [vmem:[#allocation5 + $0x1d0] sm:$0xff]  ;;  %s995_s27 = sshll.u32 %s1678_s20, 4  ;;  %s981_s16 = scalar_lea.sflag [#allocation4], %s1557_s30  ;;  %s1935_s27 = int_to_ptr.vmem [resolvable:$true] %s995_s27 }
  0x59   : > { %338 = vmatpush1.msra.mxu0 %v311_v3  ;;  %595 = vmatpush1.msra.mxu1 %v313_v4  ;;  %v304_v9 = vld [vmem:[#allocation5 + $0x1a8] sm:$0xff]  ;;  %v306_v10 = vld [vmem:[#allocation5 + $0x1b8] sm:$0xff]  ;;  %v303_v11 = vld [vmem:[#allocation5 + $0x1a0] sm:$0xff]  ;;  %s1329_s9 = scalar_lea.vmem %s1935_s27, 16384  ;;  %p2003_p10 = scmp.ne.s32.totalorder %s1997_s10, 0 }
  0x5a   : > { %339 = vmatprep.subr.mxu0 %v308_v5  ;;  %596 = vmatprep.subr.mxu1 %v310_v6  ;;  %v305_v12 = vld [vmem:[#allocation5 + $0x1b0] sm:$0xff]  ;;  %v300_v13 = vld [vmem:[#allocation5 + $0x188] sm:$0xff]  ;;  %v302_v14 = vld [vmem:[#allocation5 + $0x198] sm:$0xff]  ;;  %p1330_p11 = scmp.ne.s32.totalorder %s1935_s27, %s1329_s9  ;;  %s1407_s17 = smov [#allocation8]  }
  0x5b   : > { %340 = vmatpush1.msra.mxu0 %v307_v7  ;;  %597 = vmatpush1.msra.mxu1 %v309_v8  ;;  %v299_v15 = vld [vmem:[#allocation5 + $0x180] sm:$0xff]  ;;  %v301_v16 = vld [vmem:[#allocation5 + $0x190] sm:$0xff]  ;;  %v296_v17 = vld [vmem:[#allocation5 + $0x168] sm:$0xff]  ;;  %s1333_s21 = sshll.u32 %s1407_s17, 4  ;;  %s1334_s21 = int_to_ptr.vmem [resolvable:$false] %s1333_s21 }
  0x5c   : > { %341 = vmatprep.subr.mxu0 %v304_v9  ;;  %598 = vmatprep.subr.mxu1 %v306_v10  ;;  %v298_v18 = vld [vmem:[#allocation5 + $0x178] sm:$0xff]  ;;  %v295_v19 = vld [vmem:[#allocation5 + $0x160] sm:$0xff]  ;;  %v297_v20 = vld [vmem:[#allocation5 + $0x170] sm:$0xff]  ;;  %p1331_p1 = pnand %p1330_p11, %p2003_p10  ;;  %s1335_s22 = scalar_lea.vmem %s1334_s21, 32768 }
  0x5d   : > { %342 = vmatpush1.msra.mxu0 %v303_v11  ;;  %599 = vmatpush1.msra.mxu1 %v305_v12  ;;  %v292_v21 = vld [vmem:[#allocation5 + $0x148] sm:$0xff]  ;;  %v294_v22 = vld [vmem:[#allocation5 + $0x158] sm:$0xff]  ;;  %v291_v23 = vld [vmem:[#allocation5 + $0x140] sm:$0xff]  ;;  %p1336_p6 = scmp.lt.s32.totalorder %s1935_s27, %s1334_s21  ;;  %p1337_p12 = scmp.lt.s32.totalorder %s1335_s22, %s1329_s9 }
  0x5e   : > { %343 = vmatprep.subr.mxu0 %v300_v13  ;;  %600 = vmatprep.subr.mxu1 %v302_v14  ;;  %v293_v24 = vld [vmem:[#allocation5 + $0x150] sm:$0xff]  ;;  %v288_v25 = vld [vmem:[#allocation5 + $0x128] sm:$0xff]  ;;  %v290_v26 = vld [vmem:[#allocation5 + $0x138] sm:$0xff]  ;;  %p1332_p2 = pneg %p1331_p1 }
  0x5f   : > { %344 = vmatpush1.msra.mxu0 %v299_v15  ;;  %601 = vmatpush1.msra.mxu1 %v301_v16  ;;  %v287_v27 = vld [vmem:[#allocation5 + $0x120] sm:$0xff]  ;;  %v289_v28 = vld [vmem:[#allocation5 + $0x130] sm:$0xff]  ;;  %v284_v29 = vld [vmem:[#allocation5 + $0x108] sm:$0xff]  ;;  %p1338_p7 = por %p1337_p12, %p1336_p6 }
  0x60   : > { %345 = vmatprep.subr.mxu0 %v296_v17  ;;  %602 = vmatprep.subr.mxu1 %v298_v18  ;;  %v286_v30 = vld [vmem:[#allocation5 + $0x118] sm:$0xff]  ;;  %v283_v31 = vld [vmem:[#allocation5 + $0x100] sm:$0xff]  ;;  %v285_v32 = vld [vmem:[#allocation5 + $0x110] sm:$0xff] }
  0x61   : > { %346 = vmatpush1.msra.mxu0 %v295_v19  ;;  %603 = vmatpush1.msra.mxu1 %v297_v20  ;;  %v280_v33 = vld [vmem:[#allocation5 + $0xe8] sm:$0xff]  ;;  %v282_v34 = vld [vmem:[#allocation5 + $0xf8] sm:$0xff]  ;;  %v279_v35 = vld [vmem:[#allocation5 + $0xe0] sm:$0xff]  ;;  %p1339_p9 = pnand %p1338_p7, %p1332_p2 }
  0x62   : > { %347 = vmatprep.subr.mxu0 %v292_v21  ;;  %604 = vmatprep.subr.mxu1 %v294_v22  ;;  %v281_v36 = vld [vmem:[#allocation5 + $0xf0] sm:$0xff]  ;;  %v276_v37 = vld [vmem:[#allocation5 + $0xc8] sm:$0xff]  ;;  %v278_v38 = vld [vmem:[#allocation5 + $0xd8] sm:$0xff] }
  0x63   : > { %348 = vmatpush1.msra.mxu0 %v291_v23  ;;  %605 = vmatpush1.msra.mxu1 %v293_v24  ;;  %v275_v39 = vld [vmem:[#allocation5 + $0xc0] sm:$0xff]  ;;  %v277_v40 = vld [vmem:[#allocation5 + $0xd0] sm:$0xff]  ;;  %v272_v41 = vld [vmem:[#allocation5 + $0xa8] sm:$0xff] }
  0x64   : > { %349 = vmatprep.subr.mxu0 %v288_v25  ;;  %606 = vmatprep.subr.mxu1 %v290_v26  ;;  %v274_v42 = vld [vmem:[#allocation5 + $0xb8] sm:$0xff]  ;;  %v271_v43 = vld [vmem:[#allocation5 + $0xa0] sm:$0xff]  ;;  %v273_v44 = vld [vmem:[#allocation5 + $0xb0] sm:$0xff] }
  0x65   : > { %350 = vmatpush1.msra.mxu0 %v287_v27  ;;  %607 = vmatpush1.msra.mxu1 %v289_v28  ;;  %v268_v45 = vld [vmem:[#allocation5 + $0x88] sm:$0xff]  ;;  %v270_v46 = vld [vmem:[#allocation5 + $0x98] sm:$0xff]  ;;  %v267_v47 = vld [vmem:[#allocation5 + $0x80] sm:$0xff] }
  0x66   : > { %351 = vmatprep.subr.mxu0 %v284_v29  ;;  %608 = vmatprep.subr.mxu1 %v286_v30  ;;  %v269_v48 = vld [vmem:[#allocation5 + $0x90] sm:$0xff]  ;;  %v264_v49 = vld [vmem:[#allocation5 + $0x68] sm:$0xff]  ;;  %v266_v50 = vld [vmem:[#allocation5 + $0x78] sm:$0xff] }
  0x67   : > { %352 = vmatpush1.msra.mxu0 %v283_v31  ;;  %609 = vmatpush1.msra.mxu1 %v285_v32  ;;  %v263_v51 = vld [vmem:[#allocation5 + $0x60] sm:$0xff]  ;;  %v265_v52 = vld [vmem:[#allocation5 + $0x70] sm:$0xff]  ;;  %v260_v53 = vld [vmem:[#allocation5 + $0x48] sm:$0xff] }
  0x68   : > { %353 = vmatprep.subr.mxu0 %v280_v33  ;;  %610 = vmatprep.subr.mxu1 %v282_v34  ;;  %v262_v54 = vld [vmem:[#allocation5 + $0x58] sm:$0xff]  ;;  %v259_v55 = vld [vmem:[#allocation5 + $0x40] sm:$0xff]  ;;  %v261_v56 = vld [vmem:[#allocation5 + $0x50] sm:$0xff]  ;;  %v317_v34 = vlaneseq }
  0x69   : > { %354 = vmatpush1.msra.mxu0 %v279_v35  ;;  %611 = vmatpush1.msra.mxu1 %v281_v36  ;;  %v256_v57 = vld [vmem:[#allocation5 + $0x28] sm:$0xff]  ;;  %v258_v58 = vld [vmem:[#allocation5 + $0x38] sm:$0xff]  ;;  %v255_v59 = vld [vmem:[#allocation5 + $0x20] sm:$0xff] }
  0x6a   : > { %355 = vmatprep.subr.mxu0 %v276_v37  ;;  %612 = vmatprep.subr.mxu1 %v278_v38  ;;  %v257_v60 = vld [vmem:[#allocation5 + $0x30] sm:$0xff]  ;;  %v252_v61 = vld [vmem:[#allocation5 + $0x8] sm:$0xff]  ;;  %v254_v62 = vld [vmem:[#allocation5 + $0x18] sm:$0xff]  ;;  %v318_v35 = vshrl.u32 %v317_v34, 7 }
  0x6b   : > { %356 = vmatpush1.msra.mxu0 %v275_v39  ;;  %613 = vmatpush1.msra.mxu1 %v277_v40  ;;  %v251_v63 = vld [vmem:[#allocation5] sm:$0xff]  ;;  %v253_v1 = vld [vmem:[#allocation5 + $0x10] sm:$0xff]  ;;  %v220_v3 = vld [vmem:[%s1561_s6 + $0x8] sm:$0xff] }
  0x6c   : > { %357 = vmatprep.subr.mxu0 %v272_v41  ;;  %614 = vmatprep.subr.mxu1 %v274_v42  ;;  %v219_v2 = vld [vmem:[%s1561_s6] sm:$0xff]  ;;  %v221_v4 = vld [vmem:[%s1561_s6 + $0x10] sm:$0xff]  ;;  %v222_v5 = vld [vmem:[%s1561_s6 + $0x18] sm:$0xff]  ;;  %v319_v36 = vsub.s32 0, %v318_v35  ;;  %v327_v37 = vsub.s32 2, %v318_v35  ;;  %v323_v39 = vsub.s32 1, %v318_v35 }
  0x6d   : > { %358 = vmatpush1.msra.mxu0 %v271_v43  ;;  %615 = vmatpush1.msra.mxu1 %v273_v44  ;;  %v223_v6 = vld [vmem:[%s1561_s6 + $0x20] sm:$0xff]  ;;  %v224_v7 = vld [vmem:[%s1561_s6 + $0x28] sm:$0xff]  ;;  %v225_v8 = vld [vmem:[%s1561_s6 + $0x30] sm:$0xff]  ;;  %v331_v40 = vsub.s32 3, %v318_v35 }
  0x6e   : > { %359 = vmatprep.subr.mxu0 %v268_v45  ;;  %616 = vmatprep.subr.mxu1 %v270_v46  ;;  %v226_v9 = vld [vmem:[%s1561_s6 + $0x38] sm:$0xff]  ;;  %v227_v10 = vld [vmem:[%s1561_s6 + $0x40] sm:$0xff]  ;;  %v228_v11 = vld [vmem:[%s1561_s6 + $0x48] sm:$0xff] }
  0x6f   : > { %360 = vmatpush1.msra.mxu0 %v267_v47  ;;  %617 = vmatpush1.msra.mxu1 %v269_v48  ;;  %v229_v12 = vld [vmem:[%s1561_s6 + $0x50] sm:$0xff]  ;;  %v230_v13 = vld [vmem:[%s1561_s6 + $0x58] sm:$0xff]  ;;  %v231_v14 = vld [vmem:[%s1561_s6 + $0x60] sm:$0xff] }
  0x70   : > { %361 = vmatprep.subr.mxu0 %v264_v49  ;;  %618 = vmatprep.subr.mxu1 %v266_v50  ;;  %v232_v15 = vld [vmem:[%s1561_s6 + $0x68] sm:$0xff]  ;;  %v233_v16 = vld [vmem:[%s1561_s6 + $0x70] sm:$0xff]  ;;  %v234_v17 = vld [vmem:[%s1561_s6 + $0x78] sm:$0xff] }
  0x71   : > { %362 = vmatpush1.msra.mxu0 %v263_v51  ;;  %619 = vmatpush1.msra.mxu1 %v265_v52  ;;  %v235_v18 = vld [vmem:[%s1561_s6 + $0x80] sm:$0xff]  ;;  %v236_v19 = vld [vmem:[%s1561_s6 + $0x88] sm:$0xff]  ;;  %v237_v20 = vld [vmem:[%s1561_s6 + $0x90] sm:$0xff] }
  0x72   : > { %363 = vmatprep.subr.mxu0 %v260_v53  ;;  %620 = vmatprep.subr.mxu1 %v262_v54  ;;  %v238_v21 = vld [vmem:[%s1561_s6 + $0x98] sm:$0xff]  ;;  %v239_v22 = vld [vmem:[%s1561_s6 + $0xa0] sm:$0xff]  ;;  %v240_v23 = vld [vmem:[%s1561_s6 + $0xa8] sm:$0xff] }
  0x73   : > { %364 = vmatpush1.msra.mxu0 %v259_v55  ;;  %621 = vmatpush1.msra.mxu1 %v261_v56  ;;  %v241_v24 = vld [vmem:[%s1561_s6 + $0xb0] sm:$0xff]  ;;  %v242_v25 = vld [vmem:[%s1561_s6 + $0xb8] sm:$0xff]  ;;  %v243_v26 = vld [vmem:[%s1561_s6 + $0xc0] sm:$0xff] }
  0x74   : > { %365 = vmatprep.subr.mxu0 %v256_v57  ;;  %622 = vmatprep.subr.mxu1 %v258_v58  ;;  %v244_v27 = vld [vmem:[%s1561_s6 + $0xc8] sm:$0xff]  ;;  %v245_v28 = vld [vmem:[%s1561_s6 + $0xd0] sm:$0xff]  ;;  %v246_v29 = vld [vmem:[%s1561_s6 + $0xd8] sm:$0xff] }
  0x75   : > { %366 = vmatpush1.msra.mxu0 %v255_v59  ;;  %623 = vmatpush1.msra.mxu1 %v257_v60  ;;  %v247_v30 = vld [vmem:[%s1561_s6 + $0xe0] sm:$0xff]  ;;  %v248_v31 = vld [vmem:[%s1561_s6 + $0xe8] sm:$0xff]  ;;  %v249_v32 = vld [vmem:[%s1561_s6 + $0xf0] sm:$0xff] }
  0x76   : > { %367 = vmatprep.subr.mxu0 %v252_v61  ;;  %624 = vmatprep.subr.mxu1 %v254_v62  ;;  %v250_v33 = vld [vmem:[%s1561_s6 + $0xf8] sm:$0xff]  ;;  %v315_v38 = vld [vmem:[#allocation7] sm:$0xf] }
  0x77   : > { %368 = vmatpush1.msra.mxu0 %v251_v63  ;;  %625 = vmatpush1.msra.mxu1 %v253_v1  ;;  %v1668_v41 = vrot.slane %v315_v38, %v319_v36  ;;  %v1670_v42 = vrot.slane %v315_v38, %v327_v37  ;;  %v1672_v43 = vrot.slane %v315_v38, %v323_v39 }
  0x78   : > { %402 = vmatmul.mubr.f32.vlgmr.msra.gmra.mxu0 %v219_v2  ;;  %659 = vmatmul.mubr.f32.vlgmr.msra.gmra.mxu1 %v219_v2  ;;  %v1674_v44 = vrot.slane %v315_v38, %v331_v40 }
  0x79   : > { %407 = vmatprep.mubr.f32.mxu0 %v1406_v0  ;;  %664 = vmatprep.mubr.f32.mxu1 %v1406_v0 }
  0x7c   : > { %408 = vmatmul.mubr.f32.gmra.mxu0 %v220_v3  ;;  %665 = vmatmul.mubr.f32.gmra.mxu1 %v220_v3 }
  0x7d   : > { %413 = vmatprep.mubr.f32.mxu0 %v1406_v0  ;;  %670 = vmatprep.mubr.f32.mxu1 %v1406_v0 }
  0x80   : > { %414 = vmatmul.mubr.f32.gmra.mxu0 %v221_v4  ;;  %671 = vmatmul.mubr.f32.gmra.mxu1 %v221_v4 }
  0x81   : > { %419 = vmatprep.mubr.f32.mxu0 %v1406_v0  ;;  %676 = vmatprep.mubr.f32.mxu1 %v1406_v0 }
  0x84   : > { %420 = vmatmul.mubr.f32.gmra.mxu0 %v222_v5  ;;  %677 = vmatmul.mubr.f32.gmra.mxu1 %v222_v5 }
  0x85   : > { %425 = vmatprep.mubr.f32.mxu0 %v1406_v0  ;;  %682 = vmatprep.mubr.f32.mxu1 %v1406_v0 }
  0x88   : > { %426 = vmatmul.mubr.f32.gmra.mxu0 %v223_v6  ;;  %683 = vmatmul.mubr.f32.gmra.mxu1 %v223_v6 }
  0x89   : > { %431 = vmatprep.mubr.f32.mxu0 %v1406_v0  ;;  %688 = vmatprep.mubr.f32.mxu1 %v1406_v0 }
  0x8c   : > { %432 = vmatmul.mubr.f32.gmra.mxu0 %v224_v7  ;;  %689 = vmatmul.mubr.f32.gmra.mxu1 %v224_v7 }
  0x8d   : > { %437 = vmatprep.mubr.f32.mxu0 %v1406_v0  ;;  %694 = vmatprep.mubr.f32.mxu1 %v1406_v0 }
  0x90   : > { %438 = vmatmul.mubr.f32.gmra.mxu0 %v225_v8  ;;  %695 = vmatmul.mubr.f32.gmra.mxu1 %v225_v8 }
  0x91   : > { %443 = vmatprep.mubr.f32.mxu0 %v1406_v0  ;;  %700 = vmatprep.mubr.f32.mxu1 %v1406_v0 }
  0x94   : > { %444 = vmatmul.mubr.f32.gmra.mxu0 %v226_v9  ;;  %701 = vmatmul.mubr.f32.gmra.mxu1 %v226_v9 }
  0x95   : > { %449 = vmatprep.mubr.f32.mxu0 %v1406_v0  ;;  %706 = vmatprep.mubr.f32.mxu1 %v1406_v0 }
  0x98   : > { %450 = vmatmul.mubr.f32.gmra.mxu0 %v227_v10  ;;  %707 = vmatmul.mubr.f32.gmra.mxu1 %v227_v10 }
  0x99   : > { %455 = vmatprep.mubr.f32.mxu0 %v1406_v0  ;;  %712 = vmatprep.mubr.f32.mxu1 %v1406_v0 }
  0x9c   : > { %456 = vmatmul.mubr.f32.gmra.mxu0 %v228_v11  ;;  %713 = vmatmul.mubr.f32.gmra.mxu1 %v228_v11 }
  0x9d   : > { %461 = vmatprep.mubr.f32.mxu0 %v1406_v0  ;;  %718 = vmatprep.mubr.f32.mxu1 %v1406_v0 }
  0xa0   : > { %462 = vmatmul.mubr.f32.gmra.mxu0 %v229_v12  ;;  %719 = vmatmul.mubr.f32.gmra.mxu1 %v229_v12 }
  0xa1   : > { %467 = vmatprep.mubr.f32.mxu0 %v1406_v0  ;;  %724 = vmatprep.mubr.f32.mxu1 %v1406_v0 }
  0xa4   : > { %468 = vmatmul.mubr.f32.gmra.mxu0 %v230_v13  ;;  %725 = vmatmul.mubr.f32.gmra.mxu1 %v230_v13 }
  0xa5   : > { %473 = vmatprep.mubr.f32.mxu0 %v1406_v0  ;;  %730 = vmatprep.mubr.f32.mxu1 %v1406_v0 }
  0xa8   : > { %474 = vmatmul.mubr.f32.gmra.mxu0 %v231_v14  ;;  %731 = vmatmul.mubr.f32.gmra.mxu1 %v231_v14 }
  0xa9   : > { %479 = vmatprep.mubr.f32.mxu0 %v1406_v0  ;;  %736 = vmatprep.mubr.f32.mxu1 %v1406_v0 }
  0xac   : > { %480 = vmatmul.mubr.f32.gmra.mxu0 %v232_v15  ;;  %737 = vmatmul.mubr.f32.gmra.mxu1 %v232_v15 }
  0xad   : > { %485 = vmatprep.mubr.f32.mxu0 %v1406_v0  ;;  %742 = vmatprep.mubr.f32.mxu1 %v1406_v0 }
  0xb0   : > { %486 = vmatmul.mubr.f32.gmra.mxu0 %v233_v16  ;;  %743 = vmatmul.mubr.f32.gmra.mxu1 %v233_v16 }
  0xb1   : > { %491 = vmatprep.mubr.f32.mxu0 %v1406_v0  ;;  %748 = vmatprep.mubr.f32.mxu1 %v1406_v0 }
  0xb4   : > { %492 = vmatmul.mubr.f32.gmra.mxu0 %v234_v17  ;;  %749 = vmatmul.mubr.f32.gmra.mxu1 %v234_v17 }
  0xb5   : > { %497 = vmatprep.mubr.f32.mxu0 %v1406_v0  ;;  %754 = vmatprep.mubr.f32.mxu1 %v1406_v0 }
  0xb8   : > { %498 = vmatmul.mubr.f32.gmra.mxu0 %v235_v18  ;;  %755 = vmatmul.mubr.f32.gmra.mxu1 %v235_v18 }
  0xb9   : > { %503 = vmatprep.mubr.f32.mxu0 %v1406_v0  ;;  %760 = vmatprep.mubr.f32.mxu1 %v1406_v0 }
  0xbc   : > { %504 = vmatmul.mubr.f32.gmra.mxu0 %v236_v19  ;;  %761 = vmatmul.mubr.f32.gmra.mxu1 %v236_v19 }
  0xbd   : > { %509 = vmatprep.mubr.f32.mxu0 %v1406_v0  ;;  %766 = vmatprep.mubr.f32.mxu1 %v1406_v0 }
  0xc0   : > { %510 = vmatmul.mubr.f32.gmra.mxu0 %v237_v20  ;;  %767 = vmatmul.mubr.f32.gmra.mxu1 %v237_v20 }
  0xc1   : > { %515 = vmatprep.mubr.f32.mxu0 %v1406_v0  ;;  %772 = vmatprep.mubr.f32.mxu1 %v1406_v0 }
  0xc4   : > { %516 = vmatmul.mubr.f32.gmra.mxu0 %v238_v21  ;;  %773 = vmatmul.mubr.f32.gmra.mxu1 %v238_v21 }
  0xc5   : > { %521 = vmatprep.mubr.f32.mxu0 %v1406_v0  ;;  %778 = vmatprep.mubr.f32.mxu1 %v1406_v0 }
  0xc8   : > { %522 = vmatmul.mubr.f32.gmra.mxu0 %v239_v22  ;;  %779 = vmatmul.mubr.f32.gmra.mxu1 %v239_v22 }
  0xc9   : > { %527 = vmatprep.mubr.f32.mxu0 %v1406_v0  ;;  %784 = vmatprep.mubr.f32.mxu1 %v1406_v0 }
  0xcc   : > { %528 = vmatmul.mubr.f32.gmra.mxu0 %v240_v23  ;;  %785 = vmatmul.mubr.f32.gmra.mxu1 %v240_v23 }
  0xcd   : > { %533 = vmatprep.mubr.f32.mxu0 %v1406_v0  ;;  %790 = vmatprep.mubr.f32.mxu1 %v1406_v0 }
  0xd0   : > { %534 = vmatmul.mubr.f32.gmra.mxu0 %v241_v24  ;;  %791 = vmatmul.mubr.f32.gmra.mxu1 %v241_v24 }
  0xd1   : > { %539 = vmatprep.mubr.f32.mxu0 %v1406_v0  ;;  %796 = vmatprep.mubr.f32.mxu1 %v1406_v0 }
  0xd4   : > { %540 = vmatmul.mubr.f32.gmra.mxu0 %v242_v25  ;;  %797 = vmatmul.mubr.f32.gmra.mxu1 %v242_v25 }
  0xd5   : > { %545 = vmatprep.mubr.f32.mxu0 %v1406_v0  ;;  %802 = vmatprep.mubr.f32.mxu1 %v1406_v0 }
  0xd8   : > { %546 = vmatmul.mubr.f32.gmra.mxu0 %v243_v26  ;;  %803 = vmatmul.mubr.f32.gmra.mxu1 %v243_v26 }
  0xd9   : > { %551 = vmatprep.mubr.f32.mxu0 %v1406_v0  ;;  %808 = vmatprep.mubr.f32.mxu1 %v1406_v0 }
  0xdc   : > { %552 = vmatmul.mubr.f32.gmra.mxu0 %v244_v27  ;;  %809 = vmatmul.mubr.f32.gmra.mxu1 %v244_v27 }
  0xdd   : > { %557 = vmatprep.mubr.f32.mxu0 %v1406_v0  ;;  %814 = vmatprep.mubr.f32.mxu1 %v1406_v0 }
  0xe0   : > { %558 = vmatmul.mubr.f32.gmra.mxu0 %v245_v28  ;;  %815 = vmatmul.mubr.f32.gmra.mxu1 %v245_v28 }
  0xe1   : > { %563 = vmatprep.mubr.f32.mxu0 %v1406_v0  ;;  %820 = vmatprep.mubr.f32.mxu1 %v1406_v0 }
  0xe4   : > { %564 = vmatmul.mubr.f32.gmra.mxu0 %v246_v29  ;;  %821 = vmatmul.mubr.f32.gmra.mxu1 %v246_v29 }
  0xe5   : > { %569 = vmatprep.mubr.f32.mxu0 %v1406_v0  ;;  %826 = vmatprep.mubr.f32.mxu1 %v1406_v0 }
  0xe8   : > { %570 = vmatmul.mubr.f32.gmra.mxu0 %v247_v30  ;;  %827 = vmatmul.mubr.f32.gmra.mxu1 %v247_v30 }
  0xe9   : > { %575 = vmatprep.mubr.f32.mxu0 %v1406_v0  ;;  %832 = vmatprep.mubr.f32.mxu1 %v1406_v0 }
  0xec   : > { %576 = vmatmul.mubr.f32.gmra.mxu0 %v248_v31  ;;  %833 = vmatmul.mubr.f32.gmra.mxu1 %v248_v31 }
  0xed   : > { %581 = vmatprep.mubr.f32.mxu0 %v1406_v0  ;;  %838 = vmatprep.mubr.f32.mxu1 %v1406_v0 }
  0xf0   : > { %582 = vmatmul.mubr.f32.gmra.mxu0 %v249_v32  ;;  %839 = vmatmul.mubr.f32.gmra.mxu1 %v249_v32 }
  0xf1   : > { %587 = vmatprep.mubr.f32.mxu0 %v1406_v0  ;;  %844 = vmatprep.mubr.f32.mxu1 %v1406_v0 }
  0xf4   : > { %588 = vmatmul.mubr.f32.gmra.mxu0 %v250_v33  ;;  %845 = vmatmul.mubr.f32.gmra.mxu1 %v250_v33 }
 0x138   : > { %v403_v0 = vpop.f32.mrf.mxu0  ;;  %v660_v45 = vpop.f32.mrf.mxu1 }
 0x139   : > { %v404_v46 = vadd.f32 %v403_v0, %v1668_v41  ;;  %v661_v47 = vadd.f32 %v660_v45, %v1670_v42 }
 0x13a   : > { %v405_v48 = vpop.f32.mrf.mxu0  ;;  %v662_v49 = vpop.f32.mrf.mxu1 }
 0x13b   : > { %851 = vst [vmem:[%s1678_s20] sm:$0xff] %v404_v46  ;;  %1101 = vst [vmem:[%s1678_s20 + $0x20] sm:$0xff] %v661_v47  ;;  %v406_v50 = vadd.f32 %v405_v48, %v1672_v43  ;;  %v663_v51 = vadd.f32 %v662_v49, %v1674_v44 }
 0x13c   : > { %v409_v52 = vpop.f32.mrf.mxu0  ;;  %v666_v53 = vpop.f32.mrf.mxu1 }
 0x13d   : > { %852 = vst [vmem:[%s1678_s20 + $0x8] sm:$0xff] %v406_v50  ;;  %1102 = vst [vmem:[%s1678_s20 + $0x28] sm:$0xff] %v663_v51  ;;  %v410_v54 = vadd.f32 %v409_v52, %v1668_v41  ;;  %v667_v55 = vadd.f32 %v666_v53, %v1670_v42 }
 0x13e   : > { %v411_v56 = vpop.f32.mrf.mxu0  ;;  %v668_v57 = vpop.f32.mrf.mxu1 }
 0x13f   : > { %853 = vst [vmem:[%s1678_s20 + $0x10] sm:$0xff] %v410_v54  ;;  %1103 = vst [vmem:[%s1678_s20 + $0x30] sm:$0xff] %v667_v55  ;;  %v412_v58 = vadd.f32 %v411_v56, %v1672_v43  ;;  %v669_v59 = vadd.f32 %v668_v57, %v1674_v44 }
 0x140   : > { %v415_v60 = vpop.f32.mrf.mxu0  ;;  %v672_v61 = vpop.f32.mrf.mxu1 }
 0x141   : > { %854 = vst [vmem:[%s1678_s20 + $0x18] sm:$0xff] %v412_v58  ;;  %1104 = vst [vmem:[%s1678_s20 + $0x38] sm:$0xff] %v669_v59  ;;  %v416_v62 = vadd.f32 %v415_v60, %v1668_v41  ;;  %v673_v63 = vadd.f32 %v672_v61, %v1670_v42 }
 0x142   : > { %v417_v1 = vpop.f32.mrf.mxu0  ;;  %v674_v2 = vpop.f32.mrf.mxu1 }
 0x143   : > { %855 = vst [vmem:[%s1678_s20 + $0x40] sm:$0xff] %v416_v62  ;;  %1105 = vst [vmem:[%s1678_s20 + $0x60] sm:$0xff] %v673_v63  ;;  %v418_v3 = vadd.f32 %v417_v1, %v1672_v43  ;;  %v675_v4 = vadd.f32 %v674_v2, %v1674_v44 }
 0x144   : > { %v421_v5 = vpop.f32.mrf.mxu0  ;;  %v678_v6 = vpop.f32.mrf.mxu1 }
 0x145   : > { %856 = vst [vmem:[%s1678_s20 + $0x48] sm:$0xff] %v418_v3  ;;  %1106 = vst [vmem:[%s1678_s20 + $0x68] sm:$0xff] %v675_v4  ;;  %v422_v7 = vadd.f32 %v421_v5, %v1668_v41  ;;  %v679_v8 = vadd.f32 %v678_v6, %v1670_v42 }
 0x146   : > { %v423_v9 = vpop.f32.mrf.mxu0  ;;  %v680_v10 = vpop.f32.mrf.mxu1 }
 0x147   : > { %857 = vst [vmem:[%s1678_s20 + $0x50] sm:$0xff] %v422_v7  ;;  %1107 = vst [vmem:[%s1678_s20 + $0x70] sm:$0xff] %v679_v8  ;;  %v424_v11 = vadd.f32 %v423_v9, %v1672_v43  ;;  %v681_v12 = vadd.f32 %v680_v10, %v1674_v44 }
 0x148   : > { %v427_v13 = vpop.f32.mrf.mxu0  ;;  %v684_v14 = vpop.f32.mrf.mxu1 }
 0x149   : > { %858 = vst [vmem:[%s1678_s20 + $0x58] sm:$0xff] %v424_v11  ;;  %1108 = vst [vmem:[%s1678_s20 + $0x78] sm:$0xff] %v681_v12  ;;  %v428_v15 = vadd.f32 %v427_v13, %v1668_v41  ;;  %v685_v16 = vadd.f32 %v684_v14, %v1670_v42 }
 0x14a   : > { %v429_v17 = vpop.f32.mrf.mxu0  ;;  %v686_v18 = vpop.f32.mrf.mxu1 }
 0x14b   : > { %859 = vst [vmem:[%s1678_s20 + $0x80] sm:$0xff] %v428_v15  ;;  %1109 = vst [vmem:[%s1678_s20 + $0xa0] sm:$0xff] %v685_v16  ;;  %v430_v19 = vadd.f32 %v429_v17, %v1672_v43  ;;  %v687_v20 = vadd.f32 %v686_v18, %v1674_v44 }
 0x14c   : > { %v433_v21 = vpop.f32.mrf.mxu0  ;;  %v690_v22 = vpop.f32.mrf.mxu1 }
 0x14d   : > { %860 = vst [vmem:[%s1678_s20 + $0x88] sm:$0xff] %v430_v19  ;;  %1110 = vst [vmem:[%s1678_s20 + $0xa8] sm:$0xff] %v687_v20  ;;  %v434_v23 = vadd.f32 %v433_v21, %v1668_v41  ;;  %v691_v24 = vadd.f32 %v690_v22, %v1670_v42 }
 0x14e   : > { %v435_v25 = vpop.f32.mrf.mxu0  ;;  %v692_v26 = vpop.f32.mrf.mxu1 }
 0x14f   : > { %861 = vst [vmem:[%s1678_s20 + $0x90] sm:$0xff] %v434_v23  ;;  %1111 = vst [vmem:[%s1678_s20 + $0xb0] sm:$0xff] %v691_v24  ;;  %v436_v27 = vadd.f32 %v435_v25, %v1672_v43  ;;  %v693_v28 = vadd.f32 %v692_v26, %v1674_v44 }
 0x150   : > { %v439_v29 = vpop.f32.mrf.mxu0  ;;  %v696_v30 = vpop.f32.mrf.mxu1 }
 0x151   : > { %862 = vst [vmem:[%s1678_s20 + $0x98] sm:$0xff] %v436_v27  ;;  %1112 = vst [vmem:[%s1678_s20 + $0xb8] sm:$0xff] %v693_v28  ;;  %v440_v31 = vadd.f32 %v439_v29, %v1668_v41  ;;  %v697_v32 = vadd.f32 %v696_v30, %v1670_v42 }
 0x152   : > { %v441_v33 = vpop.f32.mrf.mxu0  ;;  %v698_v34 = vpop.f32.mrf.mxu1 }
 0x153   : > { %863 = vst [vmem:[%s1678_s20 + $0xc0] sm:$0xff] %v440_v31  ;;  %1113 = vst [vmem:[%s1678_s20 + $0xe0] sm:$0xff] %v697_v32  ;;  %v442_v35 = vadd.f32 %v441_v33, %v1672_v43  ;;  %v699_v36 = vadd.f32 %v698_v34, %v1674_v44 }
 0x154   : > { %v445_v37 = vpop.f32.mrf.mxu0  ;;  %v702_v38 = vpop.f32.mrf.mxu1 }
 0x155   : > { %864 = vst [vmem:[%s1678_s20 + $0xc8] sm:$0xff] %v442_v35  ;;  %1114 = vst [vmem:[%s1678_s20 + $0xe8] sm:$0xff] %v699_v36  ;;  %v446_v39 = vadd.f32 %v445_v37, %v1668_v41  ;;  %v703_v40 = vadd.f32 %v702_v38, %v1670_v42 }
 0x156   : > { %v447_v0 = vpop.f32.mrf.mxu0  ;;  %v704_v45 = vpop.f32.mrf.mxu1 }
 0x157   : > { %865 = vst [vmem:[%s1678_s20 + $0xd0] sm:$0xff] %v446_v39  ;;  %1115 = vst [vmem:[%s1678_s20 + $0xf0] sm:$0xff] %v703_v40  ;;  %v448_v46 = vadd.f32 %v447_v0, %v1672_v43  ;;  %v705_v47 = vadd.f32 %v704_v45, %v1674_v44 }
 0x158   : > { %v451_v48 = vpop.f32.mrf.mxu0  ;;  %v708_v49 = vpop.f32.mrf.mxu1 }
 0x159   : > { %866 = vst [vmem:[%s1678_s20 + $0xd8] sm:$0xff] %v448_v46  ;;  %1116 = vst [vmem:[%s1678_s20 + $0xf8] sm:$0xff] %v705_v47  ;;  %v452_v50 = vadd.f32 %v451_v48, %v1668_v41  ;;  %v709_v51 = vadd.f32 %v708_v49, %v1670_v42 }
 0x15a   : > { %v453_v52 = vpop.f32.mrf.mxu0  ;;  %v710_v53 = vpop.f32.mrf.mxu1 }
 0x15b   : > { %867 = vst [vmem:[%s1678_s20 + $0x100] sm:$0xff] %v452_v50  ;;  %1117 = vst [vmem:[%s1678_s20 + $0x120] sm:$0xff] %v709_v51  ;;  %v454_v54 = vadd.f32 %v453_v52, %v1672_v43  ;;  %v711_v55 = vadd.f32 %v710_v53, %v1674_v44 }
 0x15c   : > { %v457_v56 = vpop.f32.mrf.mxu0  ;;  %v714_v57 = vpop.f32.mrf.mxu1 }
 0x15d   : > { %868 = vst [vmem:[%s1678_s20 + $0x108] sm:$0xff] %v454_v54  ;;  %1118 = vst [vmem:[%s1678_s20 + $0x128] sm:$0xff] %v711_v55  ;;  %v458_v58 = vadd.f32 %v457_v56, %v1668_v41  ;;  %v715_v59 = vadd.f32 %v714_v57, %v1670_v42 }
 0x15e   : > { %v459_v60 = vpop.f32.mrf.mxu0  ;;  %v716_v61 = vpop.f32.mrf.mxu1 }
 0x15f   : > { %869 = vst [vmem:[%s1678_s20 + $0x110] sm:$0xff] %v458_v58  ;;  %1119 = vst [vmem:[%s1678_s20 + $0x130] sm:$0xff] %v715_v59  ;;  %v460_v62 = vadd.f32 %v459_v60, %v1672_v43  ;;  %v717_v63 = vadd.f32 %v716_v61, %v1674_v44 }
 0x160   : > { %v463_v1 = vpop.f32.mrf.mxu0  ;;  %v720_v2 = vpop.f32.mrf.mxu1 }
 0x161   : > { %870 = vst [vmem:[%s1678_s20 + $0x118] sm:$0xff] %v460_v62  ;;  %1120 = vst [vmem:[%s1678_s20 + $0x138] sm:$0xff] %v717_v63  ;;  %v464_v3 = vadd.f32 %v463_v1, %v1668_v41  ;;  %v721_v4 = vadd.f32 %v720_v2, %v1670_v42 }
 0x162   : > { %v465_v5 = vpop.f32.mrf.mxu0  ;;  %v722_v6 = vpop.f32.mrf.mxu1 }
 0x163   : > { %871 = vst [vmem:[%s1678_s20 + $0x140] sm:$0xff] %v464_v3  ;;  %1121 = vst [vmem:[%s1678_s20 + $0x160] sm:$0xff] %v721_v4  ;;  %v466_v7 = vadd.f32 %v465_v5, %v1672_v43  ;;  %v723_v8 = vadd.f32 %v722_v6, %v1674_v44 }
 0x164   : > { %v469_v9 = vpop.f32.mrf.mxu0  ;;  %v726_v10 = vpop.f32.mrf.mxu1 }
 0x165   : > { %872 = vst [vmem:[%s1678_s20 + $0x148] sm:$0xff] %v466_v7  ;;  %1122 = vst [vmem:[%s1678_s20 + $0x168] sm:$0xff] %v723_v8  ;;  %v470_v11 = vadd.f32 %v469_v9, %v1668_v41  ;;  %v727_v12 = vadd.f32 %v726_v10, %v1670_v42 }
 0x166   : > { %v471_v13 = vpop.f32.mrf.mxu0  ;;  %v728_v14 = vpop.f32.mrf.mxu1 }
 0x167   : > { %873 = vst [vmem:[%s1678_s20 + $0x150] sm:$0xff] %v470_v11  ;;  %1123 = vst [vmem:[%s1678_s20 + $0x170] sm:$0xff] %v727_v12  ;;  %v472_v15 = vadd.f32 %v471_v13, %v1672_v43  ;;  %v729_v16 = vadd.f32 %v728_v14, %v1674_v44 }
 0x168   : > { %v475_v17 = vpop.f32.mrf.mxu0  ;;  %v732_v18 = vpop.f32.mrf.mxu1 }
 0x169   : > { %874 = vst [vmem:[%s1678_s20 + $0x158] sm:$0xff] %v472_v15  ;;  %1124 = vst [vmem:[%s1678_s20 + $0x178] sm:$0xff] %v729_v16  ;;  %v476_v19 = vadd.f32 %v475_v17, %v1668_v41  ;;  %v733_v20 = vadd.f32 %v732_v18, %v1670_v42 }
 0x16a   : > { %v477_v21 = vpop.f32.mrf.mxu0  ;;  %v734_v22 = vpop.f32.mrf.mxu1 }
 0x16b   : > { %875 = vst [vmem:[%s1678_s20 + $0x180] sm:$0xff] %v476_v19  ;;  %1125 = vst [vmem:[%s1678_s20 + $0x1a0] sm:$0xff] %v733_v20  ;;  %v478_v23 = vadd.f32 %v477_v21, %v1672_v43  ;;  %v735_v24 = vadd.f32 %v734_v22, %v1674_v44 }
 0x16c   : > { %v481_v25 = vpop.f32.mrf.mxu0  ;;  %v738_v26 = vpop.f32.mrf.mxu1 }
 0x16d   : > { %876 = vst [vmem:[%s1678_s20 + $0x188] sm:$0xff] %v478_v23  ;;  %1126 = vst [vmem:[%s1678_s20 + $0x1a8] sm:$0xff] %v735_v24  ;;  %v482_v27 = vadd.f32 %v481_v25, %v1668_v41  ;;  %v739_v28 = vadd.f32 %v738_v26, %v1670_v42 }
 0x16e   : > { %v483_v29 = vpop.f32.mrf.mxu0  ;;  %v740_v30 = vpop.f32.mrf.mxu1 }
 0x16f   : > { %877 = vst [vmem:[%s1678_s20 + $0x190] sm:$0xff] %v482_v27  ;;  %1127 = vst [vmem:[%s1678_s20 + $0x1b0] sm:$0xff] %v739_v28  ;;  %v484_v31 = vadd.f32 %v483_v29, %v1672_v43  ;;  %v741_v32 = vadd.f32 %v740_v30, %v1674_v44 }
 0x170   : > { %v487_v33 = vpop.f32.mrf.mxu0  ;;  %v744_v34 = vpop.f32.mrf.mxu1 }
 0x171   : > { %878 = vst [vmem:[%s1678_s20 + $0x198] sm:$0xff] %v484_v31  ;;  %1128 = vst [vmem:[%s1678_s20 + $0x1b8] sm:$0xff] %v741_v32  ;;  %v488_v35 = vadd.f32 %v487_v33, %v1668_v41  ;;  %v745_v36 = vadd.f32 %v744_v34, %v1670_v42 }
 0x172   : > { %v489_v37 = vpop.f32.mrf.mxu0  ;;  %v746_v38 = vpop.f32.mrf.mxu1 }
 0x173   : > { %879 = vst [vmem:[%s1678_s20 + $0x1c0] sm:$0xff] %v488_v35  ;;  %1129 = vst [vmem:[%s1678_s20 + $0x1e0] sm:$0xff] %v745_v36  ;;  %v490_v39 = vadd.f32 %v489_v37, %v1672_v43  ;;  %v747_v40 = vadd.f32 %v746_v38, %v1674_v44 }
 0x174   : > { %v493_v0 = vpop.f32.mrf.mxu0  ;;  %v750_v45 = vpop.f32.mrf.mxu1 }
 0x175   : > { %880 = vst [vmem:[%s1678_s20 + $0x1c8] sm:$0xff] %v490_v39  ;;  %1130 = vst [vmem:[%s1678_s20 + $0x1e8] sm:$0xff] %v747_v40  ;;  %v494_v46 = vadd.f32 %v493_v0, %v1668_v41  ;;  %v751_v47 = vadd.f32 %v750_v45, %v1670_v42 }
 0x176   : > { %v495_v48 = vpop.f32.mrf.mxu0  ;;  %v752_v49 = vpop.f32.mrf.mxu1 }
 0x177   : > { %881 = vst [vmem:[%s1678_s20 + $0x1d0] sm:$0xff] %v494_v46  ;;  %1131 = vst [vmem:[%s1678_s20 + $0x1f0] sm:$0xff] %v751_v47  ;;  %v496_v50 = vadd.f32 %v495_v48, %v1672_v43  ;;  %v753_v51 = vadd.f32 %v752_v49, %v1674_v44 }
 0x178   : > { %v499_v52 = vpop.f32.mrf.mxu0  ;;  %v756_v53 = vpop.f32.mrf.mxu1 }
 0x179   : > { %882 = vst [vmem:[%s1678_s20 + $0x1d8] sm:$0xff] %v496_v50  ;;  %1132 = vst [vmem:[%s1678_s20 + $0x1f8] sm:$0xff] %v753_v51  ;;  %v500_v54 = vadd.f32 %v499_v52, %v1668_v41  ;;  %v757_v55 = vadd.f32 %v756_v53, %v1670_v42 }
 0x17a   : > { %v501_v56 = vpop.f32.mrf.mxu0  ;;  %v758_v57 = vpop.f32.mrf.mxu1 }
 0x17b   : > { %883 = vst [vmem:[%s1678_s20 + $0x200] sm:$0xff] %v500_v54  ;;  %1133 = vst [vmem:[%s1678_s20 + $0x220] sm:$0xff] %v757_v55  ;;  %v502_v58 = vadd.f32 %v501_v56, %v1672_v43  ;;  %v759_v59 = vadd.f32 %v758_v57, %v1674_v44 }
 0x17c   : > { %v505_v60 = vpop.f32.mrf.mxu0  ;;  %v762_v61 = vpop.f32.mrf.mxu1 }
 0x17d   : > { %884 = vst [vmem:[%s1678_s20 + $0x208] sm:$0xff] %v502_v58  ;;  %1134 = vst [vmem:[%s1678_s20 + $0x228] sm:$0xff] %v759_v59  ;;  %v506_v62 = vadd.f32 %v505_v60, %v1668_v41  ;;  %v763_v63 = vadd.f32 %v762_v61, %v1670_v42 }
 0x17e   : > { %v507_v1 = vpop.f32.mrf.mxu0  ;;  %v764_v2 = vpop.f32.mrf.mxu1 }
 0x17f   : > { %885 = vst [vmem:[%s1678_s20 + $0x210] sm:$0xff] %v506_v62  ;;  %1135 = vst [vmem:[%s1678_s20 + $0x230] sm:$0xff] %v763_v63  ;;  %v508_v3 = vadd.f32 %v507_v1, %v1672_v43  ;;  %v765_v4 = vadd.f32 %v764_v2, %v1674_v44 }
 0x180   : > { %v511_v5 = vpop.f32.mrf.mxu0  ;;  %v768_v6 = vpop.f32.mrf.mxu1 }
 0x181   : > { %886 = vst [vmem:[%s1678_s20 + $0x218] sm:$0xff] %v508_v3  ;;  %1136 = vst [vmem:[%s1678_s20 + $0x238] sm:$0xff] %v765_v4  ;;  %v512_v7 = vadd.f32 %v511_v5, %v1668_v41  ;;  %v769_v8 = vadd.f32 %v768_v6, %v1670_v42 }
 0x182   : > { %v513_v9 = vpop.f32.mrf.mxu0  ;;  %v770_v10 = vpop.f32.mrf.mxu1 }
 0x183   : > { %887 = vst [vmem:[%s1678_s20 + $0x240] sm:$0xff] %v512_v7  ;;  %1137 = vst [vmem:[%s1678_s20 + $0x260] sm:$0xff] %v769_v8  ;;  %v514_v11 = vadd.f32 %v513_v9, %v1672_v43  ;;  %v771_v12 = vadd.f32 %v770_v10, %v1674_v44 }
 0x184   : > { %v517_v13 = vpop.f32.mrf.mxu0  ;;  %v774_v14 = vpop.f32.mrf.mxu1 }
 0x185   : > { %888 = vst [vmem:[%s1678_s20 + $0x248] sm:$0xff] %v514_v11  ;;  %1138 = vst [vmem:[%s1678_s20 + $0x268] sm:$0xff] %v771_v12  ;;  %v518_v15 = vadd.f32 %v517_v13, %v1668_v41  ;;  %v775_v16 = vadd.f32 %v774_v14, %v1670_v42 }
 0x186   : > { %v519_v17 = vpop.f32.mrf.mxu0  ;;  %v776_v18 = vpop.f32.mrf.mxu1 }
 0x187   : > { %889 = vst [vmem:[%s1678_s20 + $0x250] sm:$0xff] %v518_v15  ;;  %1139 = vst [vmem:[%s1678_s20 + $0x270] sm:$0xff] %v775_v16  ;;  %v520_v19 = vadd.f32 %v519_v17, %v1672_v43  ;;  %v777_v20 = vadd.f32 %v776_v18, %v1674_v44 }
 0x188   : > { %v523_v21 = vpop.f32.mrf.mxu0  ;;  %v780_v22 = vpop.f32.mrf.mxu1 }
 0x189   : > { %890 = vst [vmem:[%s1678_s20 + $0x258] sm:$0xff] %v520_v19  ;;  %1140 = vst [vmem:[%s1678_s20 + $0x278] sm:$0xff] %v777_v20  ;;  %v524_v23 = vadd.f32 %v523_v21, %v1668_v41  ;;  %v781_v24 = vadd.f32 %v780_v22, %v1670_v42 }
 0x18a   : > { %v525_v25 = vpop.f32.mrf.mxu0  ;;  %v782_v26 = vpop.f32.mrf.mxu1 }
 0x18b   : > { %891 = vst [vmem:[%s1678_s20 + $0x280] sm:$0xff] %v524_v23  ;;  %1141 = vst [vmem:[%s1678_s20 + $0x2a0] sm:$0xff] %v781_v24  ;;  %v526_v27 = vadd.f32 %v525_v25, %v1672_v43  ;;  %v783_v28 = vadd.f32 %v782_v26, %v1674_v44 }
 0x18c   : > { %v529_v29 = vpop.f32.mrf.mxu0  ;;  %v786_v30 = vpop.f32.mrf.mxu1 }
 0x18d   : > { %892 = vst [vmem:[%s1678_s20 + $0x288] sm:$0xff] %v526_v27  ;;  %1142 = vst [vmem:[%s1678_s20 + $0x2a8] sm:$0xff] %v783_v28  ;;  %v530_v31 = vadd.f32 %v529_v29, %v1668_v41  ;;  %v787_v32 = vadd.f32 %v786_v30, %v1670_v42 }
 0x18e   : > { %v531_v33 = vpop.f32.mrf.mxu0  ;;  %v788_v34 = vpop.f32.mrf.mxu1 }
 0x18f   : > { %893 = vst [vmem:[%s1678_s20 + $0x290] sm:$0xff] %v530_v31  ;;  %1143 = vst [vmem:[%s1678_s20 + $0x2b0] sm:$0xff] %v787_v32  ;;  %v532_v35 = vadd.f32 %v531_v33, %v1672_v43  ;;  %v789_v36 = vadd.f32 %v788_v34, %v1674_v44 }
 0x190   : > { %v535_v37 = vpop.f32.mrf.mxu0  ;;  %v792_v38 = vpop.f32.mrf.mxu1 }
 0x191   : > { %894 = vst [vmem:[%s1678_s20 + $0x298] sm:$0xff] %v532_v35  ;;  %1144 = vst [vmem:[%s1678_s20 + $0x2b8] sm:$0xff] %v789_v36  ;;  %v536_v39 = vadd.f32 %v535_v37, %v1668_v41  ;;  %v793_v40 = vadd.f32 %v792_v38, %v1670_v42 }
 0x192   : > { %v537_v0 = vpop.f32.mrf.mxu0  ;;  %v794_v45 = vpop.f32.mrf.mxu1 }
 0x193   : > { %895 = vst [vmem:[%s1678_s20 + $0x2c0] sm:$0xff] %v536_v39  ;;  %1145 = vst [vmem:[%s1678_s20 + $0x2e0] sm:$0xff] %v793_v40  ;;  %v538_v46 = vadd.f32 %v537_v0, %v1672_v43  ;;  %v795_v47 = vadd.f32 %v794_v45, %v1674_v44 }
 0x194   : > { %v541_v48 = vpop.f32.mrf.mxu0  ;;  %v798_v49 = vpop.f32.mrf.mxu1 }
 0x195   : > { %896 = vst [vmem:[%s1678_s20 + $0x2c8] sm:$0xff] %v538_v46  ;;  %1146 = vst [vmem:[%s1678_s20 + $0x2e8] sm:$0xff] %v795_v47  ;;  %v542_v50 = vadd.f32 %v541_v48, %v1668_v41  ;;  %v799_v51 = vadd.f32 %v798_v49, %v1670_v42 }
 0x196   : > { %v543_v52 = vpop.f32.mrf.mxu0  ;;  %v800_v53 = vpop.f32.mrf.mxu1 }
 0x197   : > { %897 = vst [vmem:[%s1678_s20 + $0x2d0] sm:$0xff] %v542_v50  ;;  %1147 = vst [vmem:[%s1678_s20 + $0x2f0] sm:$0xff] %v799_v51  ;;  %v544_v54 = vadd.f32 %v543_v52, %v1672_v43  ;;  %v801_v55 = vadd.f32 %v800_v53, %v1674_v44 }
 0x198   : > { %v547_v56 = vpop.f32.mrf.mxu0  ;;  %v804_v57 = vpop.f32.mrf.mxu1 }
 0x199   : > { %898 = vst [vmem:[%s1678_s20 + $0x2d8] sm:$0xff] %v544_v54  ;;  %1148 = vst [vmem:[%s1678_s20 + $0x2f8] sm:$0xff] %v801_v55  ;;  %v548_v58 = vadd.f32 %v547_v56, %v1668_v41  ;;  %v805_v59 = vadd.f32 %v804_v57, %v1670_v42 }
 0x19a   : > { %v549_v60 = vpop.f32.mrf.mxu0  ;;  %v806_v61 = vpop.f32.mrf.mxu1 }
 0x19b   : > { %899 = vst [vmem:[%s1678_s20 + $0x300] sm:$0xff] %v548_v58  ;;  %1149 = vst [vmem:[%s1678_s20 + $0x320] sm:$0xff] %v805_v59  ;;  %v550_v62 = vadd.f32 %v549_v60, %v1672_v43  ;;  %v807_v63 = vadd.f32 %v806_v61, %v1674_v44 }
 0x19c   : > { %v553_v1 = vpop.f32.mrf.mxu0  ;;  %v810_v2 = vpop.f32.mrf.mxu1 }
 0x19d   : > { %900 = vst [vmem:[%s1678_s20 + $0x308] sm:$0xff] %v550_v62  ;;  %1150 = vst [vmem:[%s1678_s20 + $0x328] sm:$0xff] %v807_v63  ;;  %v554_v3 = vadd.f32 %v553_v1, %v1668_v41  ;;  %v811_v4 = vadd.f32 %v810_v2, %v1670_v42 }
 0x19e   : > { %v555_v5 = vpop.f32.mrf.mxu0  ;;  %v812_v6 = vpop.f32.mrf.mxu1 }
 0x19f   : > { %901 = vst [vmem:[%s1678_s20 + $0x310] sm:$0xff] %v554_v3  ;;  %1151 = vst [vmem:[%s1678_s20 + $0x330] sm:$0xff] %v811_v4  ;;  %v556_v7 = vadd.f32 %v555_v5, %v1672_v43  ;;  %v813_v8 = vadd.f32 %v812_v6, %v1674_v44 }
 0x1a0   : > { %v559_v9 = vpop.f32.mrf.mxu0  ;;  %v816_v10 = vpop.f32.mrf.mxu1 }
 0x1a1   : > { %902 = vst [vmem:[%s1678_s20 + $0x318] sm:$0xff] %v556_v7  ;;  %1152 = vst [vmem:[%s1678_s20 + $0x338] sm:$0xff] %v813_v8  ;;  %v560_v11 = vadd.f32 %v559_v9, %v1668_v41  ;;  %v817_v12 = vadd.f32 %v816_v10, %v1670_v42 }
 0x1a2   : > { %v561_v13 = vpop.f32.mrf.mxu0  ;;  %v818_v14 = vpop.f32.mrf.mxu1 }
 0x1a3   : > { %903 = vst [vmem:[%s1678_s20 + $0x340] sm:$0xff] %v560_v11  ;;  %1153 = vst [vmem:[%s1678_s20 + $0x360] sm:$0xff] %v817_v12  ;;  %v562_v15 = vadd.f32 %v561_v13, %v1672_v43  ;;  %v819_v16 = vadd.f32 %v818_v14, %v1674_v44 }
 0x1a4   : > { %v565_v17 = vpop.f32.mrf.mxu0  ;;  %v822_v18 = vpop.f32.mrf.mxu1 }
 0x1a5   : > { %904 = vst [vmem:[%s1678_s20 + $0x348] sm:$0xff] %v562_v15  ;;  %1154 = vst [vmem:[%s1678_s20 + $0x368] sm:$0xff] %v819_v16  ;;  %v566_v19 = vadd.f32 %v565_v17, %v1668_v41  ;;  %v823_v20 = vadd.f32 %v822_v18, %v1670_v42 }
 0x1a6   : > { %v567_v21 = vpop.f32.mrf.mxu0  ;;  %v824_v22 = vpop.f32.mrf.mxu1 }
 0x1a7   : > { %905 = vst [vmem:[%s1678_s20 + $0x350] sm:$0xff] %v566_v19  ;;  %1155 = vst [vmem:[%s1678_s20 + $0x370] sm:$0xff] %v823_v20  ;;  %v568_v23 = vadd.f32 %v567_v21, %v1672_v43  ;;  %v825_v24 = vadd.f32 %v824_v22, %v1674_v44 }
 0x1a8   : > { %v571_v25 = vpop.f32.mrf.mxu0  ;;  %v828_v26 = vpop.f32.mrf.mxu1 }
 0x1a9   : > { %906 = vst [vmem:[%s1678_s20 + $0x358] sm:$0xff] %v568_v23  ;;  %1156 = vst [vmem:[%s1678_s20 + $0x378] sm:$0xff] %v825_v24  ;;  %v572_v27 = vadd.f32 %v571_v25, %v1668_v41  ;;  %v829_v28 = vadd.f32 %v828_v26, %v1670_v42 }
 0x1aa   : > { %v573_v29 = vpop.f32.mrf.mxu0  ;;  %v830_v30 = vpop.f32.mrf.mxu1 }
 0x1ab   : > { %907 = vst [vmem:[%s1678_s20 + $0x380] sm:$0xff] %v572_v27  ;;  %1157 = vst [vmem:[%s1678_s20 + $0x3a0] sm:$0xff] %v829_v28  ;;  %v574_v31 = vadd.f32 %v573_v29, %v1672_v43  ;;  %v831_v32 = vadd.f32 %v830_v30, %v1674_v44 }
 0x1ac   : > { %v577_v33 = vpop.f32.mrf.mxu0  ;;  %v834_v34 = vpop.f32.mrf.mxu1 }
 0x1ad   : > { %908 = vst [vmem:[%s1678_s20 + $0x388] sm:$0xff] %v574_v31  ;;  %1158 = vst [vmem:[%s1678_s20 + $0x3a8] sm:$0xff] %v831_v32  ;;  %v578_v35 = vadd.f32 %v577_v33, %v1668_v41  ;;  %v835_v36 = vadd.f32 %v834_v34, %v1670_v42 }
 0x1ae   : > { %v579_v37 = vpop.f32.mrf.mxu0  ;;  %v836_v38 = vpop.f32.mrf.mxu1 }
 0x1af   : > { %909 = vst [vmem:[%s1678_s20 + $0x390] sm:$0xff] %v578_v35  ;;  %1159 = vst [vmem:[%s1678_s20 + $0x3b0] sm:$0xff] %v835_v36  ;;  %v580_v39 = vadd.f32 %v579_v37, %v1672_v43  ;;  %v837_v40 = vadd.f32 %v836_v38, %v1674_v44 }
 0x1b0   : > { %v583_v0 = vpop.f32.mrf.mxu0  ;;  %v840_v45 = vpop.f32.mrf.mxu1 }
 0x1b1   : > { %910 = vst [vmem:[%s1678_s20 + $0x398] sm:$0xff] %v580_v39  ;;  %1160 = vst [vmem:[%s1678_s20 + $0x3b8] sm:$0xff] %v837_v40  ;;  %v584_v46 = vadd.f32 %v583_v0, %v1668_v41  ;;  %v841_v47 = vadd.f32 %v840_v45, %v1670_v42 }
 0x1b2   : > { %v585_v48 = vpop.f32.mrf.mxu0  ;;  %v842_v49 = vpop.f32.mrf.mxu1 }
 0x1b3   : > { %911 = vst [vmem:[%s1678_s20 + $0x3c0] sm:$0xff] %v584_v46  ;;  %1161 = vst [vmem:[%s1678_s20 + $0x3e0] sm:$0xff] %v841_v47  ;;  %v586_v50 = vadd.f32 %v585_v48, %v1672_v43  ;;  %v843_v51 = vadd.f32 %v842_v49, %v1674_v44 }
 0x1b4   : > { %v589_v52 = vpop.f32.mrf.mxu0  ;;  %v846_v53 = vpop.f32.mrf.mxu1 }
 0x1b5   : > { %912 = vst [vmem:[%s1678_s20 + $0x3c8] sm:$0xff] %v586_v50  ;;  %1162 = vst [vmem:[%s1678_s20 + $0x3e8] sm:$0xff] %v843_v51  ;;  %v590_v54 = vadd.f32 %v589_v52, %v1668_v41  ;;  %v847_v55 = vadd.f32 %v846_v53, %v1670_v42 }
 0x1b6   : > { %v591_v56 = vpop.f32.mrf.mxu0  ;;  %v848_v57 = vpop.f32.mrf.mxu1 }
 0x1b7   : > { %913 = vst [vmem:[%s1678_s20 + $0x3d0] sm:$0xff] %v590_v54  ;;  %1163 = vst [vmem:[%s1678_s20 + $0x3f0] sm:$0xff] %v847_v55  ;;  %v592_v58 = vadd.f32 %v591_v56, %v1672_v43  ;;  %v849_v41 = vadd.f32 %v848_v57, %v1674_v44 }
 0x1b9   : > { %914 = vst [vmem:[%s1678_s20 + $0x3d8] sm:$0xff] %v592_v58  ;;  %1164 = vst [vmem:[%s1678_s20 + $0x3f8] sm:$0xff] %v849_v41 }
 0x1ba   : > { %1342 = shalt.err (!%p1339_p9)
}
 0x1bb   : > { %s1343_s23 = scalar_lea.hbm %s1933_s8, 16384  ;;  %s1347_s4 = scalar_lea.hbm %s1987_s3, 32768 }
 0x1bc   : > { %p1344_p13 = scmp.ne.s32.totalorder %s1933_s8, %s1343_s23  ;;  %p1348_p4 = scmp.lt.s32.totalorder %s1933_s8, %s1987_s3 }
 0x1bd   : > { %p1349_p8 = scmp.lt.s32.totalorder %s1347_s4, %s1343_s23 }
 0x1be   : > { %p1345_p5 = pnand %p1344_p13, %p2003_p10 }
 0x1bf   : > { %p1350_p3 = por %p1349_p8, %p1348_p4 }
 0x1c0   : > { %p1346_p0 = pneg %p1345_p5 }
 0x1c2   : > { %p1351_p11 = pnand %p1350_p3, %p1346_p0 }
 0x1c4   : > { %1354 = shalt.err (!%p1351_p11)
}
 0x1c5   : > { %s1408_s18 = smov 256   ;;  %s1409_s20 = smov 16  }
 0x1c6   : > { %1185 = dma.vmem_to_hbm [thread:$0]  (%p2003_p10), %s1935_s27, 16384, %s1933_s8, %s981_s16, %s1408_s18, %s1408_s18, %s1409_s20  }
 0x1c7 PF: > { %s1010_s25 = sand.u32 1, %s1385_s12   ;;  %p2004_p1 = scmp.ne.s32.totalorder %s1993_s19, 0 }
 0x1c8   : > { %p2005_p2 = scmp.ge.s32.totalorder %s1397_s15, 2  ;;  %s1011_s28 = scalar_lea.sflag [#allocation4], %s1010_s25 }
 0x1ca   : > { %p1199_p6 = pnand %p2005_p2, %p2004_p1 }
 0x1cc   : > { %p1200_p12 = pneg %p1199_p6 }
 0x1ce   : > { %1380 = dma.done.wait (%p1200_p12), %s1011_s28, 16384  }
 0x1cf   : > { %1382 = vsyncadd (%p1200_p12), %s1011_s28, 4294950912  ;;  %p17_p7 = scmp.ge.s32.totalorder %s1502_s7, 4   ;;  %s2006_s12 = smov %s1389_s13 }
 0x1d0   : > { %s2007_s13 = smov %s1393_s14  ;;  %s2008_s14 = smov %s1518_s11 }
 0x1d1   : > { %s2009_s15 = smov %s1502_s7  ;;  %19 = sbr.rel (!%p17_p7) target bundleno = 6 (0x6), region = 86 }
 0x1d6   :  { %1016 = vsyncpa [#allocation3], 1 }
 0x1d7   :  { %1018 = vsyncpa [#allocation3 + $0x1], 1 }
 0x1d8   :  { %1019 = vsyncpa [#allocation6], 1 }
 0x1d9   :  { %1020 = vsyncpa [#allocation4], 1 }
 0x1da   :  { %1022 = vsyncpa [#allocation4 + $0x1], 1 }

</bundles_post_ra>
